<compile_context>
chip_gen: v5e
topology: v5e:2x2
jax: 0.10.0
libtpu: 0.0.40
codegen_flags: <defaults>
</compile_context>

<pallas_src>
import math

import jax
import jax.numpy as jnp
from jax.experimental import pallas as pl
from jax.experimental.pallas import tpu as pltpu


_VMEM = pl.BlockSpec(memory_space=pltpu.MemorySpace.VMEM)
_OUT_LANES = 128  # lane-dense output slab width


# ----------------------------------------------------------------------------- fused kernel

def make_ngcf_kernel(num_gnn, batch_pad):
    """Builds the fused NGCF forward kernel (closure over static sizes)."""

    def kernel(*refs):
        ids_ref, L_ref, f0_ref = refs[:3]
        gnn_refs = refs[3:3 + 2 * num_gnn]
        (fc1u_wt_ref, fc1i_wt_ref, fc1_b_ref,
         fc2_wt_ref, fc2_b_ref, fc3_w_ref, fc3_b_ref,
         out_ref) = refs[3 + 2 * num_gnn:]

        L = L_ref[...]                       # (n, n) dense normalized Laplacian
        f = f0_ref[...]                      # (n, d) initial [user|item] embeddings
        n = L.shape[0]

        # ---- GNN layers (ReLU from NGCF.forward fused in) --------------------------------
        # part1 + part2 = Linear1((L + I) @ f) + Linear2(L @ ((L @ f) * f)),
        # with (L + I) @ f == L @ f + f.  The two projections are fused into ONE matmul
        # against the host-stacked (2*d_in, d_out) weight; b = b1 + b2 pre-summed on host.
        feats = [f]
        for l in range(num_gnn):
            w12t = gnn_refs[2 * l][...]      # (2*d_in, d_out) = [w1.T ; w2.T]
            b = gnn_refs[2 * l + 1][...]     # (1, d_out) = b1 + b2
            Lf = jnp.dot(L, f, preferred_element_type=jnp.float32)
            Li = jnp.dot(L, Lf * f, preferred_element_type=jnp.float32)
            x = jnp.concatenate([Lf + f, Li], axis=-1)        # (n, 2*d) lane concat (XLU)
            pre = jnp.dot(x, w12t, preferred_element_type=jnp.float32) + b
            f = jnp.maximum(pre, 0.0)        # ReLU applied in NGCF.forward
            feats.append(f)

        # ---- fused row gather (one stacked one-hot selection matmul) ---------------------
        # ids = [uids ; iids + num_users] built on the host -> ONE (2B, n) x (n, nfeat*d)
        # gather dot; final_emb / emb are never concatenated or written back to HBM.
        F_all = jnp.concatenate(feats, axis=-1)               # (n, nfeat*d)
        iota = jax.lax.broadcasted_iota(jnp.int32, (2 * batch_pad, n), 1)
        sel = (ids_ref[...] == iota).astype(jnp.float32)      # (2B, n) one-hot rows
        G = jnp.dot(sel, F_all, preferred_element_type=jnp.float32)   # (2B, nfeat*d)

        # ---- fc1 block-wise on the user / item halves (avoids a lane concat of G) --------
        h1 = (fc1_b_ref[...]
              + jnp.dot(G[:batch_pad], fc1u_wt_ref[...],
                        preferred_element_type=jnp.float32)
              + jnp.dot(G[batch_pad:], fc1i_wt_ref[...],
                        preferred_element_type=jnp.float32))
        h1 = jnp.maximum(h1, 0.0)

        # ---- fc2 -> fc3 (width-1 output as VPU reduce) -> sigmoid ------------------------
        h2 = jnp.dot(h1, fc2_wt_ref[...],
                     preferred_element_type=jnp.float32) + fc2_b_ref[...]
        h3 = jnp.sum(h2 * fc3_w_ref[...], axis=-1, keepdims=True) + fc3_b_ref[...]
        score = jax.nn.sigmoid(h3)           # (B, 1)

        # lane-dense (B, 128) store; column 0 is sliced out by the wrapper.
        out_ref[...] = jnp.broadcast_to(score, out_ref.shape)

    return kernel


# ----------------------------------------------------------------------------- wrapper

def ngcf_forward(params, L, uids, iids, num_users):
    features = jnp.concatenate([params["user_emb"], params["item_emb"]], axis=0)
    n, d = features.shape
    num_gnn = len(params["gnn"])
    nfeat = num_gnn + 1
    batch = int(uids.shape[0])
    batch_pad = max(8, ((batch + 7) // 8) * 8)   # sublane-align the MLP head

    # Pad (uid, iid) pairs and pre-offset item ids so the kernel builds a single stacked
    # (2*B, n) one-hot selection matrix (padded rows gather row 0 and are sliced off).
    uids_p = jnp.zeros((batch_pad,), jnp.int32).at[:batch].set(uids.astype(jnp.int32))
    iids_p = jnp.zeros((batch_pad,), jnp.int32).at[:batch].set(iids.astype(jnp.int32))
    ids = jnp.concatenate([uids_p, iids_p + num_users]).reshape(2 * batch_pad, 1)

    # Host-side weight prep: stack [w1.T ; w2.T] per layer (one MXU push in-kernel),
    # pre-sum the per-layer biases, pre-transpose / split the fc weights (no in-kernel .T).
    gnn_args = []
    for (w1, b1, w2, b2) in params["gnn"]:
        gnn_args += [jnp.concatenate([w1.T, w2.T], axis=0), (b1 + b2).reshape(1, -1)]

    fc1_wt = params["fc1_w"].T                      # (2 * nfeat * d, 64)
    args = [
        ids, L, features, *gnn_args,
        fc1_wt[: nfeat * d], fc1_wt[nfeat * d:], params["fc1_b"],
        params["fc2_w"].T, params["fc2_b"],
        params["fc3_w"], params["fc3_b"],           # fc3 used as a VPU reduce in-kernel
    ]

    # Advisory cost estimate so XLA can schedule the surrounding graph sensibly.
    flops = (num_gnn * (4 * n * n * d + 4 * n * d * d)        # 2x L-matmuls + fused proj
             + 4 * batch_pad * n * nfeat * d                  # one-hot gather matmul
             + 4 * batch_pad * nfeat * d * 64                 # fc1 (two halves)
             + 2 * batch_pad * 64 * 32                        # fc2
             + 2 * batch_pad * 32)                            # fc3 reduce
    bytes_accessed = int(sum(int(a.size) * a.dtype.itemsize for a in args)
                         + batch_pad * _OUT_LANES * 4)
    cost = pl.CostEstimate(flops=int(flops), transcendentals=int(batch_pad),
                           bytes_accessed=bytes_accessed)

    kernel = make_ngcf_kernel(num_gnn=num_gnn, batch_pad=batch_pad)
    out = pl.pallas_call(
        kernel,
        out_shape=jax.ShapeDtypeStruct((batch_pad, _OUT_LANES), jnp.float32),
        in_specs=[_VMEM] * len(args),
        out_specs=_VMEM,
        cost_estimate=cost,
    )(*args)
    return out[:batch, 0]  # == .flatten() of the (batch, 1) sigmoid scores


# ----------------------------------------------------------------------------- param init (deterministic)

def init_linear(key, in_feats, out_feats):
    """PyTorch nn.Linear default: U(-1/sqrt(in), 1/sqrt(in)) for weight and bias."""
    kw, kb = jax.random.split(key)
    bound = 1.0 / math.sqrt(in_feats)
    w = jax.random.uniform(kw, (out_feats, in_feats), jnp.float32, -bound, bound)
    b = jax.random.uniform(kb, (1, out_feats), jnp.float32, -bound, bound)
    return w, b


def build_laplacian(key, num_users, num_items):
    """Synthetic normalized bipartite Laplacian: L = D^-1/2 A D^-1/2 (dense)."""
    n = num_users + num_items
    k1, k2 = jax.random.split(key)
    stars = jax.random.randint(k1, (num_users, num_items), 1, 6).astype(jnp.float32)
    mask = jax.random.bernoulli(k2, 0.3, (num_users, num_items)).astype(jnp.float32)
    R = stars * mask
    A = jnp.zeros((n, n), jnp.float32)
    A = A.at[:num_users, num_users:].set(R)
    A = A.at[num_users:, :num_users].set(R.T)
    deg = (A > 0).sum(axis=1).astype(jnp.float32)
    d_inv_sqrt = jnp.where(deg > 0, deg ** -0.5, 0.0)
    return d_inv_sqrt[:, None] * A * d_inv_sqrt[None, :]


# ----------------------------------------------------------------------------- pure-JAX reference

def ngcf_reference(params, L, uids, iids, num_users):
    features = jnp.concatenate([params["user_emb"], params["item_emb"]], axis=0)
    final_emb = features
    for (w1, b1, w2, b2) in params["gnn"]:
        Lf = L @ features
        inter = Lf * features
        feat = jnp.maximum((Lf + features) @ w1.T + b1 + (L @ inter) @ w2.T + b2, 0.0)
        features = feat
        final_emb = jnp.concatenate([final_emb, feat], axis=1)
    emb = jnp.concatenate([final_emb[uids], final_emb[iids + num_users]], axis=1)
    h = jnp.maximum(emb @ params["fc1_w"].T + params["fc1_b"], 0.0)
    h = h @ params["fc2_w"].T + params["fc2_b"]
    h = h @ params["fc3_w"].T + params["fc3_b"]
    return jax.nn.sigmoid(h).reshape(-1)


# ----------------------------------------------------------------------------- main

if __name__ == "__main__":
    # Small shapes consistent with the module: latent_dim == layers[0] == layers[-1].
    num_users, num_items = 16, 16
    latent_dim = 32
    layers = [32, 32, 32]            # -> 2 GNNLayers, final_emb dim = 32 * 3 = 96
    batch = 64                       # amortizes the MLP-head fixed MXU push latency

    key = jax.random.PRNGKey(0)
    (k_lap, k_uemb, k_iemb, k_uid, k_iid,
     k_fc1, k_fc2, k_fc3, k_gnn) = jax.random.split(key, 9)

    L = build_laplacian(k_lap, num_users, num_items)

    params = {
        # nn.Embedding default init: N(0, 1)
        "user_emb": jax.random.normal(k_uemb, (num_users, latent_dim), jnp.float32),
        "item_emb": jax.random.normal(k_iemb, (num_items, latent_dim), jnp.float32),
        "gnn": [],
    }
    gnn_keys = jax.random.split(k_gnn, len(layers) - 1)
    for (f_in, f_out), kg in zip(zip(layers[:-1], layers[1:]), gnn_keys):
        kg1, kg2 = jax.random.split(kg)
        w1, b1 = init_linear(kg1, f_in, f_out)
        w2, b2 = init_linear(kg2, f_in, f_out)
        params["gnn"].append((w1, b1, w2, b2))

    fc1_in = layers[-1] * len(layers) * 2   # 192
    params["fc1_w"], params["fc1_b"] = init_linear(k_fc1, fc1_in, 64)
    params["fc2_w"], params["fc2_b"] = init_linear(k_fc2, 64, 32)
    params["fc3_w"], params["fc3_b"] = init_linear(k_fc3, 32, 1)

    uids = jax.random.randint(k_uid, (batch,), 0, num_users)
    iids = jax.random.randint(k_iid, (batch,), 0, num_items)

    out = ngcf_forward(params, L, uids, iids, num_users)
    jax.block_until_ready(out)

    ref = ngcf_reference(params, L, uids, iids, num_users)
    assert out.shape == (batch,) and out.dtype == jnp.float32
    assert bool(jnp.allclose(out, ref, rtol=1e-4, atol=1e-4)), "mismatch vs JAX reference"
    print("KERNEL_OK")
</pallas_src>

<mosaic_0001>
module attributes {stable_mosaic.version = 11 : i64} {
  func.func @kernel(%arg0: memref<128x1xi32, #tpu.memory_space<vmem>>, %arg1: memref<32x32xf32, #tpu.memory_space<vmem>>, %arg2: memref<32x32xf32, #tpu.memory_space<vmem>>, %arg3: memref<64x32xf32, #tpu.memory_space<vmem>>, %arg4: memref<1x32xf32, #tpu.memory_space<vmem>>, %arg5: memref<64x32xf32, #tpu.memory_space<vmem>>, %arg6: memref<1x32xf32, #tpu.memory_space<vmem>>, %arg7: memref<96x64xf32, #tpu.memory_space<vmem>>, %arg8: memref<96x64xf32, #tpu.memory_space<vmem>>, %arg9: memref<1x64xf32, #tpu.memory_space<vmem>>, %arg10: memref<64x32xf32, #tpu.memory_space<vmem>>, %arg11: memref<1x32xf32, #tpu.memory_space<vmem>>, %arg12: memref<1x32xf32, #tpu.memory_space<vmem>>, %arg13: memref<1x1xf32, #tpu.memory_space<vmem>>, %arg14: memref<64x128xf32, #tpu.memory_space<vmem>>) attributes {dimension_semantics = [], scalar_prefetch = 0 : i64, scratch_operands = 0 : i64, tpu.core_type = #tpu.core_type<tc>} {
    %c0 = arith.constant 0 : index
    %c0_0 = arith.constant 0 : index
    %0 = vector.load %arg1[%c0, %c0_0] : memref<32x32xf32, #tpu.memory_space<vmem>>, vector<32x32xf32>
    %c0_1 = arith.constant 0 : index
    %c0_2 = arith.constant 0 : index
    %1 = vector.load %arg2[%c0_1, %c0_2] : memref<32x32xf32, #tpu.memory_space<vmem>>, vector<32x32xf32>
    %c0_3 = arith.constant 0 : index
    %c0_4 = arith.constant 0 : index
    %2 = vector.load %arg3[%c0_3, %c0_4] : memref<64x32xf32, #tpu.memory_space<vmem>>, vector<64x32xf32>
    %c0_5 = arith.constant 0 : index
    %c0_6 = arith.constant 0 : index
    %3 = vector.load %arg4[%c0_5, %c0_6] : memref<1x32xf32, #tpu.memory_space<vmem>>, vector<1x32xf32>
    %cst = arith.constant dense<0.000000e+00> : vector<32x32xf32>
    %4 = tpu.matmul %0, %1, %cst {dimension_numbers = #tpu.dot_dimension_numbers<[1], [0], [0], [1], [0, 0, 1, 1], [], []>} : vector<32x32xf32>, vector<32x32xf32>, vector<32x32xf32> -> vector<32x32xf32>
    %5 = arith.mulf %4, %1 : vector<32x32xf32>
    %cst_7 = arith.constant dense<0.000000e+00> : vector<32x32xf32>
    %6 = tpu.matmul %0, %5, %cst_7 {dimension_numbers = #tpu.dot_dimension_numbers<[1], [0], [0], [1], [0, 0, 1, 1], [], []>} : vector<32x32xf32>, vector<32x32xf32>, vector<32x32xf32> -> vector<32x32xf32>
    %7 = arith.addf %4, %1 : vector<32x32xf32>
    %8 = tpu.concatenate %7, %6 in 1 : vector<32x32xf32>, vector<32x32xf32> -> vector<32x64xf32>
    %cst_8 = arith.constant dense<0.000000e+00> : vector<32x32xf32>
    %9 = tpu.matmul %8, %2, %cst_8 {dimension_numbers = #tpu.dot_dimension_numbers<[1], [0], [0], [1], [0, 0, 1, 1], [], []>} : vector<32x64xf32>, vector<64x32xf32>, vector<32x32xf32> -> vector<32x32xf32>
    %10 = vector.broadcast %3 : vector<1x32xf32> to vector<32x32xf32>
    %11 = arith.addf %9, %10 : vector<32x32xf32>
    %cst_9 = arith.constant 0.000000e+00 : f32
    %12 = vector.broadcast %cst_9 : f32 to vector<32x32xf32>
    %13 = arith.maximumf %11, %12 : vector<32x32xf32>
    %c0_10 = arith.constant 0 : index
    %c0_11 = arith.constant 0 : index
    %14 = vector.load %arg5[%c0_10, %c0_11] : memref<64x32xf32, #tpu.memory_space<vmem>>, vector<64x32xf32>
    %c0_12 = arith.constant 0 : index
    %c0_13 = arith.constant 0 : index
    %15 = vector.load %arg6[%c0_12, %c0_13] : memref<1x32xf32, #tpu.memory_space<vmem>>, vector<1x32xf32>
    %cst_14 = arith.constant dense<0.000000e+00> : vector<32x32xf32>
    %16 = tpu.matmul %0, %13, %cst_14 {dimension_numbers = #tpu.dot_dimension_numbers<[1], [0], [0], [1], [0, 0, 1, 1], [], []>} : vector<32x32xf32>, vector<32x32xf32>, vector<32x32xf32> -> vector<32x32xf32>
    %17 = arith.mulf %16, %13 : vector<32x32xf32>
    %cst_15 = arith.constant dense<0.000000e+00> : vector<32x32xf32>
    %18 = tpu.matmul %0, %17, %cst_15 {dimension_numbers = #tpu.dot_dimension_numbers<[1], [0], [0], [1], [0, 0, 1, 1], [], []>} : vector<32x32xf32>, vector<32x32xf32>, vector<32x32xf32> -> vector<32x32xf32>
    %19 = arith.addf %16, %13 : vector<32x32xf32>
    %20 = tpu.concatenate %19, %18 in 1 : vector<32x32xf32>, vector<32x32xf32> -> vector<32x64xf32>
    %cst_16 = arith.constant dense<0.000000e+00> : vector<32x32xf32>
    %21 = tpu.matmul %20, %14, %cst_16 {dimension_numbers = #tpu.dot_dimension_numbers<[1], [0], [0], [1], [0, 0, 1, 1], [], []>} : vector<32x64xf32>, vector<64x32xf32>, vector<32x32xf32> -> vector<32x32xf32>
    %22 = vector.broadcast %15 : vector<1x32xf32> to vector<32x32xf32>
    %23 = arith.addf %21, %22 : vector<32x32xf32>
    %cst_17 = arith.constant 0.000000e+00 : f32
    %24 = vector.broadcast %cst_17 : f32 to vector<32x32xf32>
    %25 = arith.maximumf %23, %24 : vector<32x32xf32>
    %26 = tpu.concatenate %1, %13, %25 in 1 : vector<32x32xf32>, vector<32x32xf32>, vector<32x32xf32> -> vector<32x96xf32>
    %27 = tpu.iota {dimensions = array<i32: 1>} : vector<128x32xi32>
    %c0_18 = arith.constant 0 : index
    %c0_19 = arith.constant 0 : index
    %28 = vector.load %arg0[%c0_18, %c0_19] : memref<128x1xi32, #tpu.memory_space<vmem>>, vector<128x1xi32>
    %29 = vector.broadcast %28 : vector<128x1xi32> to vector<128x32xi32>
    %30 = arith.cmpi eq, %29, %27 : vector<128x32xi32>
    %31 = arith.extui %30 : vector<128x32xi1> to vector<128x32xi32>
    %32 = arith.sitofp %31 : vector<128x32xi32> to vector<128x32xf32>
    %cst_20 = arith.constant dense<0.000000e+00> : vector<128x96xf32>
    %33 = tpu.matmul %32, %26, %cst_20 {dimension_numbers = #tpu.dot_dimension_numbers<[1], [0], [0], [1], [0, 0, 1, 1], [], []>} : vector<128x32xf32>, vector<32x96xf32>, vector<128x96xf32> -> vector<128x96xf32>
    %c0_21 = arith.constant 0 : index
    %c0_22 = arith.constant 0 : index
    %34 = vector.load %arg9[%c0_21, %c0_22] : memref<1x64xf32, #tpu.memory_space<vmem>>, vector<1x64xf32>
    %35 = vector.extract_strided_slice %33 {offsets = [0, 0], sizes = [64, 96], strides = [1, 1]} : vector<128x96xf32> to vector<64x96xf32>
    %c0_23 = arith.constant 0 : index
    %c0_24 = arith.constant 0 : index
    %36 = vector.load %arg7[%c0_23, %c0_24] : memref<96x64xf32, #tpu.memory_space<vmem>>, vector<96x64xf32>
    %cst_25 = arith.constant dense<0.000000e+00> : vector<64x64xf32>
    %37 = tpu.matmul %35, %36, %cst_25 {dimension_numbers = #tpu.dot_dimension_numbers<[1], [0], [0], [1], [0, 0, 1, 1], [], []>} : vector<64x96xf32>, vector<96x64xf32>, vector<64x64xf32> -> vector<64x64xf32>
    %38 = vector.broadcast %34 : vector<1x64xf32> to vector<64x64xf32>
    %39 = arith.addf %38, %37 : vector<64x64xf32>
    %40 = vector.extract_strided_slice %33 {offsets = [64, 0], sizes = [64, 96], strides = [1, 1]} : vector<128x96xf32> to vector<64x96xf32>
    %c0_26 = arith.constant 0 : index
    %c0_27 = arith.constant 0 : index
    %41 = vector.load %arg8[%c0_26, %c0_27] : memref<96x64xf32, #tpu.memory_space<vmem>>, vector<96x64xf32>
    %cst_28 = arith.constant dense<0.000000e+00> : vector<64x64xf32>
    %42 = tpu.matmul %40, %41, %cst_28 {dimension_numbers = #tpu.dot_dimension_numbers<[1], [0], [0], [1], [0, 0, 1, 1], [], []>} : vector<64x96xf32>, vector<96x64xf32>, vector<64x64xf32> -> vector<64x64xf32>
    %43 = arith.addf %39, %42 : vector<64x64xf32>
    %cst_29 = arith.constant 0.000000e+00 : f32
    %44 = vector.broadcast %cst_29 : f32 to vector<64x64xf32>
    %45 = arith.maximumf %43, %44 : vector<64x64xf32>
    %c0_30 = arith.constant 0 : index
    %c0_31 = arith.constant 0 : index
    %46 = vector.load %arg10[%c0_30, %c0_31] : memref<64x32xf32, #tpu.memory_space<vmem>>, vector<64x32xf32>
    %cst_32 = arith.constant dense<0.000000e+00> : vector<64x32xf32>
    %47 = tpu.matmul %45, %46, %cst_32 {dimension_numbers = #tpu.dot_dimension_numbers<[1], [0], [0], [1], [0, 0, 1, 1], [], []>} : vector<64x64xf32>, vector<64x32xf32>, vector<64x32xf32> -> vector<64x32xf32>
    %c0_33 = arith.constant 0 : index
    %c0_34 = arith.constant 0 : index
    %48 = vector.load %arg11[%c0_33, %c0_34] : memref<1x32xf32, #tpu.memory_space<vmem>>, vector<1x32xf32>
    %49 = vector.broadcast %48 : vector<1x32xf32> to vector<64x32xf32>
    %50 = arith.addf %47, %49 : vector<64x32xf32>
    %c0_35 = arith.constant 0 : index
    %c0_36 = arith.constant 0 : index
    %51 = vector.load %arg12[%c0_35, %c0_36] : memref<1x32xf32, #tpu.memory_space<vmem>>, vector<1x32xf32>
    %52 = vector.broadcast %51 : vector<1x32xf32> to vector<64x32xf32>
    %53 = arith.mulf %50, %52 : vector<64x32xf32>
    %cst_37 = arith.constant dense<0.000000e+00> : vector<64xf32>
    %54 = vector.multi_reduction <add>, %53, %cst_37 [1] : vector<64x32xf32> to vector<64xf32>
    %55 = vector.shape_cast %54 : vector<64xf32> to vector<64x1xf32>
    %c0_38 = arith.constant 0 : index
    %c0_39 = arith.constant 0 : index
    %56 = vector.load %arg13[%c0_38, %c0_39] : memref<1x1xf32, #tpu.memory_space<vmem>>, vector<1x1xf32>
    %57 = vector.broadcast %56 : vector<1x1xf32> to vector<64x1xf32>
    %58 = arith.addf %55, %57 : vector<64x1xf32>
    %59 = arith.negf %58 : vector<64x1xf32>
    %60 = math.exp %59 : vector<64x1xf32>
    %cst_40 = arith.constant 1.000000e+00 : f32
    %61 = vector.broadcast %cst_40 : f32 to vector<64x1xf32>
    %62 = arith.addf %61, %60 : vector<64x1xf32>
    %63 = arith.divf %61, %62 : vector<64x1xf32>
    %64 = vector.shape_cast %63 : vector<64x1xf32> to vector<64x1xf32>
    %65 = vector.broadcast %64 : vector<64x1xf32> to vector<64x128xf32>
    %c0_41 = arith.constant 0 : index
    %c0_42 = arith.constant 0 : index
    %66 = vector.load %arg14[%c0_41, %c0_42] : memref<64x128xf32, #tpu.memory_space<vmem>>, vector<64x128xf32>
    tpu.vector_store %arg14[%c0_41, %c0_42], %65 {strides = array<i32>} : memref<64x128xf32, #tpu.memory_space<vmem>>, vector<64x128xf32>,
    return
  }
}

</mosaic_0001>

<bundles_post_ra>
// kernel: tpu_custom_call.1
= control target key start
LH: loop header
LB: loop body
LE: loop exit
PB: predicated region body
PF: predicated region fallthrough
CT: control target
= control target key end

     0   :  { %s1854_s0 = inlined_call_operand.vmem [shape: s32[128,1], index: 0, kind: input, shape index: {}]   ;;  %s1855_s1 = inlined_call_operand.vmem [shape: f32[32,32], index: 1, kind: input, shape index: {}]   ;;  %s1856_s2 = inlined_call_operand.vmem [shape: f32[32,32], index: 2, kind: input, shape index: {}]   ;;  %s1857_s3 = inlined_call_operand.vmem [shape: f32[64,32], index: 3, kind: input, shape index: {}]   ;;  %s1858_s4 = inlined_call_operand.vmem [shape: f32[1,32], index: 4, kind: input, shape index: {}]   ;;  %s1859_s5 = inlined_call_operand.vmem [shape: f32[64,32], index: 5, kind: input, shape index: {}]   ;;  %s1860_s6 = inlined_call_operand.vmem [shape: f32[1,32], index: 6, kind: input, shape index: {}]   ;;  %s1861_s7 = inlined_call_operand.vmem [shape: f32[96,64], index: 7, kind: input, shape index: {}]   ;;  %s1862_s8 = inlined_call_operand.vmem [shape: f32[96,64], index: 8, kind: input, shape index: {}]   ;;  %s1863_s9 = inlined_call_operand.vmem [shape: f32[1,64], index: 9, kind: input, shape index: {}]   ;;  %s1864_s10 = inlined_call_operand.vmem [shape: f32[64,32], index: 10, kind: input, shape index: {}]   ;;  %s1865_s11 = inlined_call_operand.vmem [shape: f32[1,32], index: 11, kind: input, shape index: {}]   ;;  %s1866_s12 = inlined_call_operand.vmem [shape: f32[1,32], index: 12, kind: input, shape index: {}]   ;;  %s1867_s13 = inlined_call_operand.<no memory space> [shape: f32[1,1], index: 13, kind: input, shape index: {}]   ;;  %s1868_s14 = inlined_call_operand.hbm [shape: f32[64,128], index: 14, kind: output, shape index: {}]  }
   0x1   :  { %v19_v0 = vstv %s1867_s13 }
   0x2   :  { %20 = vst [vmem:[#allocation2] sm:$0x1] %v19_v0 }
   0x3   :  { %v1421_v1 = vld [vmem:[%s1856_s2 + $0x18] sm:$0xff]  ;;  %v1426_v2 = vld [vmem:[%s1856_s2 + $0x10] sm:$0xff]  ;;  %v1432_v3 = vld [vmem:[%s1856_s2 + $0x8] sm:$0xff] }
   0x4   :  { %92 = vmatpush.msra.mxu0 %v1421_v1  ;;  %v1437_v4 = vld [vmem:[%s1856_s2] sm:$0xff] }
   0x6   :  { %93 = vmatpush.msra.mxu0 %v1426_v2 }
   0x7   :  { %21 = vsyncpa [#allocation4], 0  ;;  %v1444_v5 = vld [vmem:[%s1855_s1] sm:$0xff]  ;;  %vm67_vm0 = vcmask 261120   ;;  %v1452_v6 = vld [vmem:[%s1855_s1 + $0x8] sm:$0xff]  ;;  %s1333_s13 = smov 32  }
   0x8   :  { %94 = vmatpush.msra.mxu0 %v1432_v3  ;;  %v1459_v7 = vld [vmem:[%s1855_s1 + $0x10] sm:$0xff]  ;;  %v1466_v8 = vld [vmem:[%s1855_s1 + $0x18] sm:$0xff]  ;;  %v63_v19 = vld [vmem:[%s1857_s3 + $0x28] sm:$0xff]  ;;  %vm169_vm1 = vcmask 523264   ;;  %s1335_s1 = smov 64   ;;  %s1139_s28 = sshll.u32 %s1868_s14, 4  ;;  %s1140_s28 = int_to_ptr.hbm [resolvable:$true] %s1139_s28 }
   0x9   :  { %v65_v17 = vld [vmem:[%s1857_s3 + $0x38] sm:$0xff]  ;;  %v64_v18 = vld [vmem:[%s1857_s3 + $0x30] sm:$0xff]  ;;  %v62_v20 = vld [vmem:[%s1857_s3 + $0x20] sm:$0xff]  ;;  %s1339_s29 = smov 8  }
   0xa   :  { %95 = vmatpush.msra.mxu0 %v1437_v4  ;;  %190 = vmatpush.msra.mxu2 %v65_v17  ;;  %v61_v21 = vld [vmem:[%s1857_s3 + $0x18] sm:$0xff]  ;;  %v60_v23 = vld [vmem:[%s1857_s3 + $0x10] sm:$0xff]  ;;  %v59_v24 = vld [vmem:[%s1857_s3 + $0x8] sm:$0xff] }
   0xb   :  { %1151 = vmatmul.msk.f32.vlgmr.msra.gmra.mxu0 %vm67_vm0, %v1444_v5  ;;  %v58_v28 = vld [vmem:[%s1857_s3] sm:$0xff]  ;;  %v222_v63 = vld [vmem:[%s1859_s5 + $0x38] sm:$0xff]  ;;  %v221_v0 = vld [vmem:[%s1859_s5 + $0x30] sm:$0xff] }
   0xc   :  { %191 = vmatpush.msra.mxu2 %v64_v18  ;;  %v1269_v44 = vld [vmem:[%s1858_s4] ss:$0 sm:$0xff] }
   0xe   :  { %192 = vmatpush.msra.mxu2 %v63_v19 }
  0x10   :  { %193 = vmatpush.msra.mxu2 %v62_v20 }
  0x12   :  { %194 = vmatpush.msra.mxu2 %v61_v21 }
  0x13   :  { %1152 = vmatmul.msk.f32.gmra.mxu0 %vm67_vm0, %v1452_v6 }
  0x14   :  { %195 = vmatpush.msra.mxu2 %v60_v23 }
  0x16   :  { %196 = vmatpush.msra.mxu2 %v59_v24 }
  0x18   :  { %197 = vmatpush.msra.mxu2 %v58_v28  ;;  %v1334_v28 = vmov 0  }
  0x19   :  { %1267 = vset.pattern.permute.xlu1 %v1334_v28  ;;  %1266 = vset.pattern.permute.xlu0 %v1334_v28 }
  0x1a   :  { %1268 = vset.pattern.permute.xlu2 %v1334_v28 }
  0x1b   :  { %1153 = vmatmul.msk.f32.gmra.mxu0 %vm67_vm0, %v1459_v7 }
  0x23   :  { %1154 = vmatmul.msk.f32.gmra.mxu0 %vm67_vm0, %v1466_v8 }
  0x88   :  { %v97_v9 = vpop.f32.mrf.mxu0 }
  0x89   :  { %v109_v16 = vmul.f32 %v97_v9, %v1437_v4  ;;  %v142_v29 = vadd.f32 %v97_v9, %v1437_v4  ;;  %v217_v9 = vld [vmem:[%s1859_s5 + $0x10] sm:$0xff] }
  0x90   :  { %v100_v10 = vpop.f32.mrf.mxu0 }
  0x91   :  { %v110_v15 = vmul.f32 %v100_v10, %v1432_v3  ;;  %v143_v32 = vadd.f32 %v100_v10, %v1432_v3  ;;  %v216_v10 = vld [vmem:[%s1859_s5 + $0x8] sm:$0xff] }
  0x98   :  { %v103_v11 = vpop.f32.mrf.mxu0 }
  0x99   :  { %v111_v14 = vmul.f32 %v103_v11, %v1426_v2  ;;  %v144_v35 = vadd.f32 %v103_v11, %v1426_v2 }
  0xa0   :  { %v106_v12 = vpop.f32.mrf.mxu0 }
  0xa1   :  { %v112_v13 = vmul.f32 %v106_v12, %v1421_v1  ;;  %v145_v38 = vadd.f32 %v106_v12, %v1421_v1 }
  0xa3   :  { %125 = vmatpush.msra.mxu1 %v112_v13 }
  0xa5   :  { %126 = vmatpush.msra.mxu1 %v111_v14 }
  0xa7   :  { %127 = vmatpush.msra.mxu1 %v110_v15  ;;  %v215_v15 = vld [vmem:[%s1859_s5] sm:$0xff] }
  0xa9   :  { %128 = vmatpush.msra.mxu1 %v109_v16 }
  0xaa   :  { %1155 = vmatmul.msk.f32.vlgmr.msra.gmra.mxu1 %vm67_vm0, %v1444_v5 }
  0xab   :  { %333 = vmatpush.msrb.mxu1 %v222_v63 }
  0xad   :  { %334 = vmatpush.msrb.mxu1 %v221_v0 }
  0xb2   :  { %1156 = vmatmul.msk.f32.gmra.mxu1 %vm67_vm0, %v1452_v6 }
  0xba   :  { %1157 = vmatmul.msk.f32.gmra.mxu1 %vm67_vm0, %v1459_v7 }
  0xc2   :  { %1158 = vmatmul.msk.f32.gmra.mxu1 %vm67_vm0, %v1466_v8 }
 0x127   :  { %v130_v22 = vpop.f32.mrf.mxu1 }
 0x128   :  { %150 = vrot.lane.b32.xlu0 %v130_v22, %s1333_s13 }
 0x12f   :  { %v133_v25 = vpop.f32.mrf.mxu1 }
 0x130   :  { %152 = vrot.lane.b32.xlu0 %v133_v25, %s1333_s13 }
 0x137   :  { %v136_v26 = vpop.f32.mrf.mxu1 }
 0x138   :  { %154 = vrot.lane.b32.xlu1 %v136_v26, %s1333_s13 }
 0x13f   :  { %v139_v27 = vpop.f32.mrf.mxu1 }
 0x140   :  { %156 = vrot.lane.b32.xlu1 %v139_v27, %s1333_s13 }
 0x19a   :  { %v151_v30 = vpop.permute.xlu0 %150 }
 0x19b   :  { %v162_v31 = vsel %vm67_vm0, %v142_v29, %v151_v30  ;;  %v401_v29 = vld [vmem:[%s1854_s0 + $0x8] sm:$0xff] }
 0x19c   :  { %1159 = vmatmul.msk.f32.vlgmr.msra.gmra.mxu2 %vm169_vm1, %v162_v31  ;;  %v1270_v31 = vld [vmem:[%s1860_s6] ss:$0 sm:$0xff] }
 0x1a2   :  { %v153_v33 = vpop.permute.xlu0 %152 }
 0x1a3   :  { %v163_v34 = vsel %vm67_vm0, %v143_v32, %v153_v33  ;;  %v403_v32 = vld [vmem:[%s1854_s0 + $0x18] sm:$0xff] }
 0x1a4   :  { %1160 = vmatmul.msk.f32.gmra.mxu2 %vm169_vm1, %v163_v34 }
 0x1aa   :  { %v155_v36 = vpop.permute.xlu1 %154 }
 0x1ab   :  { %v164_v37 = vsel %vm67_vm0, %v144_v35, %v155_v36 }
 0x1ac   :  { %1161 = vmatmul.msk.f32.gmra.mxu2 %vm169_vm1, %v164_v37 }
 0x1b2   :  { %v157_v39 = vpop.permute.xlu1 %156 }
 0x1b3   :  { %v165_v40 = vsel %vm67_vm0, %v145_v38, %v157_v39  ;;  %v406_v39 = vld [vmem:[%s1854_s0 + $0x30] sm:$0xff] }
 0x1b4   :  { %1162 = vmatmul.msk.f32.gmra.mxu2 %vm169_vm1, %v165_v40  ;;  %v409_v40 = vld [vmem:[%s1854_s0 + $0x48] sm:$0xff] }
 0x21f   :  { %v199_v41 = vpop.f32.mrf.mxu2 }
 0x220   :  { %v200_v50 = vadd.f32 %v1269_v44, %v199_v41  ;;  %v412_v41 = vld [vmem:[%s1854_s0 + $0x60] sm:$0xff] }
 0x222   :  { %v211_v53 = vmax.f32 %v200_v50, 0.0 }
 0x227   :  { %v202_v42 = vpop.f32.mrf.mxu2 }
 0x228   :  { %v203_v48 = vadd.f32 %v1269_v44, %v202_v42  ;;  %v402_v42 = vld [vmem:[%s1854_s0 + $0x10] sm:$0xff] }
 0x22a   :  { %v212_v52 = vmax.f32 %v203_v48, 0.0 }
 0x22c   :  { %v1251_v14 = vpack.i.bf16 %v211_v53, %v212_v52 }
 0x22f   :  { %v205_v43 = vpop.f32.mrf.mxu2 }
 0x230   :  { %v206_v46 = vadd.f32 %v1269_v44, %v205_v43  ;;  %v415_v43 = vld [vmem:[%s1854_s0 + $0x78] sm:$0xff] }
 0x232   :  { %v1527_v51 = vmax.f32 %v206_v46, 0.0 }
 0x237   :  { %v208_v45 = vpop.f32.mrf.mxu2 }
 0x238   :  { %v209_v47 = vadd.f32 %v1269_v44, %v208_v45  ;;  %v404_v45 = vld [vmem:[%s1854_s0 + $0x20] sm:$0xff] }
 0x23a   :  { %v1525_v49 = vmax.f32 %v209_v47, 0.0 }
 0x23c   :  { %236 = vmatpush.msrb.mxu2 %v1525_v49  ;;  %v1246_v11 = vpack.i.bf16 %v1527_v51, %v1525_v49 }
 0x23e   :  { %237 = vmatpush.msrb.mxu2 %v1527_v51 }
 0x240   :  { %238 = vmatpush.msrb.mxu2 %v212_v52 }
 0x242   :  { %239 = vmatpush.msrb.mxu2 %v211_v53 }
 0x243   :  { %1163 = vmatmul.msk.f32.vlgmr.msrb.gmra.mxu2 %vm67_vm0, %v1444_v5 }
 0x24b   :  { %1164 = vmatmul.msk.f32.gmra.mxu2 %vm67_vm0, %v1452_v6 }
 0x253   :  { %1165 = vmatmul.msk.f32.gmra.mxu2 %vm67_vm0, %v1459_v7 }
 0x25b   :  { %1166 = vmatmul.msk.f32.gmra.mxu2 %vm67_vm0, %v1466_v8 }
 0x2c6   :  { %v241_v54 = vpop.f32.mrf.mxu2 }
 0x2c7   :  { %v253_v61 = vmul.f32 %v241_v54, %v211_v53  ;;  %v286_v16 = vadd.f32 %v241_v54, %v211_v53  ;;  %v400_v53 = vld [vmem:[%s1854_s0] sm:$0xff]  ;;  %v410_v54 = vld [vmem:[%s1854_s0 + $0x50] sm:$0xff] }
 0x2ce   :  { %v244_v55 = vpop.f32.mrf.mxu2 }
 0x2cf   :  { %v254_v60 = vmul.f32 %v244_v55, %v212_v52  ;;  %v287_v19 = vadd.f32 %v244_v55, %v212_v52  ;;  %v407_v52 = vld [vmem:[%s1854_s0 + $0x38] sm:$0xff]  ;;  %v405_v55 = vld [vmem:[%s1854_s0 + $0x28] sm:$0xff] }
 0x2d6   :  { %v247_v56 = vpop.f32.mrf.mxu2 }
 0x2d7   :  { %v255_v59 = vmul.f32 %v247_v56, %v1527_v51  ;;  %v288_v22 = vadd.f32 %v247_v56, %v1527_v51  ;;  %v413_v56 = vld [vmem:[%s1854_s0 + $0x68] sm:$0xff] }
 0x2de   :  { %v250_v57 = vpop.f32.mrf.mxu2 }
 0x2df   :  { %v256_v58 = vmul.f32 %v250_v57, %v1525_v49  ;;  %v289_v25 = vadd.f32 %v250_v57, %v1525_v49  ;;  %v408_v57 = vld [vmem:[%s1854_s0 + $0x40] sm:$0xff] }
 0x2e1   :  { %269 = vmatpush.msrb.mxu0 %v256_v58  ;;  %v411_v58 = vld [vmem:[%s1854_s0 + $0x58] sm:$0xff] }
 0x2e3   :  { %270 = vmatpush.msrb.mxu0 %v255_v59  ;;  %v414_v59 = vld [vmem:[%s1854_s0 + $0x70] sm:$0xff] }
 0x2e5   :  { %271 = vmatpush.msrb.mxu0 %v254_v60 }
 0x2e7   :  { %272 = vmatpush.msrb.mxu0 %v253_v61 }
 0x2e8   :  { %1167 = vmatmul.msk.f32.vlgmr.msrb.gmra.mxu0 %vm67_vm0, %v1444_v5  ;;  %v220_v5 = vld [vmem:[%s1859_s5 + $0x28] sm:$0xff] }
 0x2e9   :  { %335 = vmatpush.msrb.mxu1 %v220_v5 }
 0x2f0   :  { %1168 = vmatmul.msk.f32.gmra.mxu0 %vm67_vm0, %v1452_v6  ;;  %v219_v6 = vld [vmem:[%s1859_s5 + $0x20] sm:$0xff] }
 0x2f1   :  { %336 = vmatpush.msrb.mxu1 %v219_v6 }
 0x2f8   :  { %1169 = vmatmul.msk.f32.gmra.mxu0 %vm67_vm0, %v1459_v7  ;;  %v218_v7 = vld [vmem:[%s1859_s5 + $0x18] sm:$0xff] }
 0x2f9   :  { %337 = vmatpush.msrb.mxu1 %v218_v7 }
 0x2fb   :  { %338 = vmatpush.msrb.mxu1 %v217_v9 }
 0x2fd   :  { %339 = vmatpush.msrb.mxu1 %v216_v10 }
 0x2ff   :  { %340 = vmatpush.msrb.mxu1 %v215_v15 }
 0x300   :  { %1170 = vmatmul.msk.f32.gmra.mxu0 %vm67_vm0, %v1466_v8 }
 0x365   :  { %v274_v62 = vpop.f32.mrf.mxu0 }
 0x366   :  { %294 = vrot.lane.b32.xlu2 %v274_v62, %s1333_s13 }
 0x36d   :  { %v277_v8 = vpop.f32.mrf.mxu0 }
 0x36e   :  { %296 = vrot.lane.b32.xlu2 %v277_v8, %s1333_s13  ;;  %v398_v8 = vlaneseq }
 0x375   :  { %v280_v12 = vpop.f32.mrf.mxu0 }
 0x376   :  { %1247 = vrot.lane.b32.xlu2 %v1246_v11, %s1333_s13  ;;  %298 = vrot.lane.b32.xlu0 %v280_v12, %s1333_s13 }
 0x37d   :  { %v283_v13 = vpop.f32.mrf.mxu0 }
 0x37e   :  { %300 = vrot.lane.b32.xlu1 %v283_v13, %s1333_s13 }
 0x386   :  { %1252 = vrot.lane.b32.xlu1 %v1251_v14, %s1333_s13 }
 0x38e   :  { %420 = vperm.xlu1 %1267, %v401_v29  }
 0x396   :  { %426 = vperm.xlu1 %1267, %v403_v32  }
 0x39e   :  { %435 = vperm.xlu1 %1267, %v406_v39   ;;  %v637_v39 = vld [vmem:[%s1861_s7 + $0x58] sm:$0xff] }
 0x39f   :  { %667 = vmatpush.msra.mxu2 %v637_v39 }
 0x3a6   :  { %444 = vperm.xlu1 %1267, %v409_v40   ;;  %v636_v40 = vld [vmem:[%s1861_s7 + $0x50] sm:$0xff] }
 0x3a7   :  { %668 = vmatpush.msra.mxu2 %v636_v40 }
 0x3ae   :  { %453 = vperm.xlu1 %1267, %v412_v41  }
 0x3b6   :  { %462 = vperm.xlu1 %1267, %v415_v43   ;;  %v635_v43 = vld [vmem:[%s1861_s7 + $0x48] sm:$0xff] }
 0x3b7   :  { %669 = vmatpush.msra.mxu2 %v635_v43 }
 0x3c0   :  { %v295_v17 = vpop.permute.xlu2 %294 }
 0x3c1   :  { %v306_v18 = vsel %vm67_vm0, %v286_v16, %v295_v17  ;;  %v1647_v16 = vand.u32 127, %v398_v8  ;;  %v723_v8 = vld [vmem:[%s1862_s8 + $0x40] sm:$0xff] }
 0x3c2   :  { %1171 = vmatmul.msk.f32.vlgmr.msrb.gmra.mxu1 %vm169_vm1, %v306_v18 }
 0x3c8   :  { %v297_v20 = vpop.permute.xlu2 %296 }
 0x3c9   :  { %v307_v21 = vsel %vm67_vm0, %v287_v19, %v297_v20 }
 0x3ca   :  { %1172 = vmatmul.msk.f32.gmra.mxu1 %vm169_vm1, %v307_v21  ;;  %v1336_v21 = vmov 0.0  }
 0x3d0   :  { %v1248_v60 = vpop.permute.xlu2 %1247 }
 0x3d1   :  { %v1249_v61 = vunpack.i.l.bf16 %v1248_v60  ;;  %v1250_v63 = vunpack.i.h.bf16 %v1248_v60 }
 0x3d3   :  { %v393_v10 = vsel %vm67_vm0, %v1421_v1, %v1249_v61  ;;  %v392_v14 = vsel %vm67_vm0, %v1426_v2, %v1250_v63 }
 0x3e8   :  { %v299_v23 = vpop.permute.xlu0 %298 }
 0x3e9   :  { %v308_v24 = vsel %vm67_vm0, %v288_v22, %v299_v23 }
 0x3ea   :  { %1173 = vmatmul.msk.f32.gmra.mxu1 %vm169_vm1, %v308_v24 }
 0x3f0   :  { %v301_v26 = vpop.permute.xlu1 %300 }
 0x3f1   :  { %v309_v27 = vsel %vm67_vm0, %v289_v25, %v301_v26 }
 0x3f2   :  { %1174 = vmatmul.msk.f32.gmra.mxu1 %vm169_vm1, %v309_v27 }
 0x3f8   :  { %v1253_v62 = vpop.permute.xlu1 %1252 }
 0x3f9   :  { %v1254_v9 = vunpack.i.l.bf16 %v1253_v62  ;;  %v1255_v13 = vunpack.i.h.bf16 %v1253_v62 }
 0x3fb   :  { %v391_v18 = vsel %vm67_vm0, %v1432_v3, %v1254_v9  ;;  %v390_v20 = vsel %vm67_vm0, %v1437_v4, %v1255_v13  ;;  %v719_v13 = vld [vmem:[%s1862_s8 + $0x20] sm:$0xff] }
 0x400   :  { %v421_v23 = vpop.permute.xlu1 %420 }
 0x401   :  { %vm465_vm3 = vcmp.eq.s32.totalorder %v421_v23, %v1647_v16 }
 0x402   :  { %v1176_v3 = vsel %vm465_vm3, 1.0, %v1336_v21 }
 0x408   :  { %v427_v25 = vpop.permute.xlu1 %426 }
 0x409   :  { %vm467_vm5 = vcmp.eq.s32.totalorder %v427_v25, %v1647_v16 }
 0x40a   :  { %v1178_v26 = vsel %vm467_vm5, 1.0, %v1336_v21 }
 0x43f   :  { %v342_v30 = vpop.f32.mrf.mxu1 }
 0x440   :  { %v343_v33 = vadd.f32 %v1270_v31, %v342_v30 }
 0x442   :  { %v354_v36 = vmax.f32 %v343_v33, 0.0 }
 0x447   :  { %v345_v34 = vpop.f32.mrf.mxu1 }
 0x448   :  { %v346_v35 = vadd.f32 %v1270_v31, %v345_v34 }
 0x44a   :  { %v355_v37 = vmax.f32 %v346_v35, 0.0 }
 0x44c   :  { %v1256_v38 = vpack.i.bf16 %v354_v36, %v355_v37 }
 0x44e   :  { %1257 = vrot.lane.b32.xlu2 %v1256_v38, %s1335_s1 }
 0x456   :  { %423 = vperm.xlu2 %1268, %v402_v42  }
 0x45e   :  { %429 = vperm.xlu2 %1268, %v404_v45  }
 0x466   :  { %438 = vperm.xlu2 %1268, %v407_v52  }
 0x467   :  { %v348_v44 = vpop.f32.mrf.mxu1 }
 0x468   :  { %v349_v46 = vadd.f32 %v1270_v31, %v348_v44  ;;  %v634_v44 = vld [vmem:[%s1861_s7 + $0x40] sm:$0xff] }
 0x469   :  { %670 = vmatpush.msra.mxu2 %v634_v44 }
 0x46a   :  { %v356_v49 = vmax.f32 %v349_v46, 0.0  ;;  %v633_v46 = vld [vmem:[%s1861_s7 + $0x38] sm:$0xff] }
 0x46b   :  { %671 = vmatpush.msra.mxu2 %v633_v46 }
 0x46e   :  { %447 = vperm.xlu2 %1268, %v410_v54   ;;  %v627_v54 = vld [vmem:[%s1861_s7 + $0x8] sm:$0xff] }
 0x46f   :  { %v351_v47 = vpop.f32.mrf.mxu1 }
 0x470   :  { %v352_v48 = vadd.f32 %v1270_v31, %v351_v47  ;;  %v436_v31 = vpop.permute.xlu1 %435  ;;  %v632_v47 = vld [vmem:[%s1861_s7 + $0x30] sm:$0xff] }
 0x471   :  { %vm470_vm8 = vcmp.eq.s32.totalorder %v436_v31, %v1647_v16  ;;  %672 = vmatpush.msra.mxu2 %v632_v47  ;;  %v811_v31 = vld [vmem:[%s1864_s10 + $0x18] sm:$0xff] }
 0x472   :  { %v357_v50 = vmax.f32 %v352_v48, 0.0  ;;  %v1181_v32 = vsel %vm470_vm8, 1.0, %v1336_v21 }
 0x474   :  { %v1261_v51 = vpack.i.bf16 %v356_v49, %v357_v50  ;;  %v631_v49 = vld [vmem:[%s1861_s7 + $0x28] sm:$0xff]  ;;  %v630_v50 = vld [vmem:[%s1861_s7 + $0x20] sm:$0xff] }
 0x475   :  { %673 = vmatpush.msra.mxu2 %v631_v49 }
 0x476   :  { %1262 = vrot.lane.b32.xlu0 %v1261_v51, %s1335_s1  ;;  %456 = vperm.xlu2 %1268, %v413_v56   ;;  %v629_v51 = vld [vmem:[%s1861_s7 + $0x18] sm:$0xff]  ;;  %s1338_s1 = smov 128  }
 0x477   :  { %674 = vmatpush.msra.mxu2 %v630_v50 }
 0x478   :  { %v445_v37 = vpop.permute.xlu1 %444 }
 0x479   :  { %vm473_vm11 = vcmp.eq.s32.totalorder %v445_v37, %v1647_v16  ;;  %675 = vmatpush.msra.mxu2 %v629_v51  ;;  %v1271_v37 = vld [vmem:[%s1863_s9] ss:$0 sm:$0xff] }
 0x47a   :  { %v1184_v38 = vsel %vm473_vm11, 1.0, %v1336_v21 }
 0x47e   :  { %417 = vperm.xlu0 %1266, %v400_v53   ;;  %v628_v53 = vld [vmem:[%s1861_s7 + $0x10] sm:$0xff] }
 0x47f   :  { %676 = vmatpush.msra.mxu2 %v628_v53 }
 0x480   :  { %v454_v52 = vpop.permute.xlu1 %453 }
 0x481   :  { %vm476_vm14 = vcmp.eq.s32.totalorder %v454_v52, %v1647_v16  ;;  %677 = vmatpush.msra.mxu2 %v627_v54 }
 0x486   :  { %432 = vperm.xlu0 %1266, %v405_v55   ;;  %v1187_v55 = vsel %vm476_vm14, 1.0, %v1336_v21 }
 0x488   :  { %v463_v61 = vpop.permute.xlu1 %462 }
 0x489   :  { %vm479_vm3 = vcmp.eq.s32.totalorder %v463_v61, %v1647_v16 }
 0x48a   :  { %v1190_v62 = vsel %vm479_vm3, 1.0, %v1336_v21 }
 0x48e   :  { %441 = vperm.xlu0 %1266, %v408_v57   ;;  %v626_v57 = vld [vmem:[%s1861_s7] sm:$0xff] }
 0x48f   :  { %678 = vmatpush.msra.mxu2 %v626_v57 }
 0x496   :  { %450 = vperm.xlu0 %1266, %v411_v58  }
 0x49e   :  { %459 = vperm.xlu0 %1266, %v414_v59  }
 0x4a8   :  { %v1258_v0 = vpop.permute.xlu2 %1257 }
 0x4a9   :  { %v1259_v11 = vunpack.i.l.bf16 %v1258_v0  ;;  %v1260_v15 = vunpack.i.h.bf16 %v1258_v0 }
 0x4ab   :  { %v395_v19 = vsel %vm169_vm1, %v391_v18, %v1259_v11  ;;  %v394_v2 = vsel %vm169_vm1, %v390_v20, %v1260_v15  ;;  %v721_v11 = vld [vmem:[%s1862_s8 + $0x30] sm:$0xff]  ;;  %v718_v15 = vld [vmem:[%s1862_s8 + $0x18] sm:$0xff]  ;;  %v715_v18 = vld [vmem:[%s1862_s8] sm:$0xff] }
 0x4b0   :  { %v424_v24 = vpop.permute.xlu2 %423 }
 0x4b1   :  { %vm466_vm4 = vcmp.eq.s32.totalorder %v424_v24, %v1647_v16 }
 0x4b2   :  { %v1177_v4 = vsel %vm466_vm4, 1.0, %v1336_v21  ;;  %vm638_vm4 = vcmask 785408  }
 0x4b8   :  { %v430_v27 = vpop.permute.xlu2 %429 }
 0x4b9   :  { %vm468_vm6 = vcmp.eq.s32.totalorder %v430_v27, %v1647_v16  ;;  %v815_v27 = vld [vmem:[%s1864_s10 + $0x38] sm:$0xff] }
 0x4ba   :  { %v1179_v28 = vsel %vm468_vm6, 1.0, %v1336_v21  ;;  %852 = vmatpush.msra.mxu1 %v815_v27 }
 0x4c0   :  { %v439_v33 = vpop.permute.xlu2 %438 }
 0x4c1   :  { %vm471_vm9 = vcmp.eq.s32.totalorder %v439_v33, %v1647_v16  ;;  %v809_v33 = vld [vmem:[%s1864_s10 + $0x8] sm:$0xff] }
 0x4c2   :  { %v1182_v34 = vsel %vm471_vm9, 1.0, %v1336_v21 }
 0x4c8   :  { %v448_v41 = vpop.permute.xlu2 %447 }
 0x4c9   :  { %vm474_vm12 = vcmp.eq.s32.totalorder %v448_v41, %v1647_v16 }
 0x4ca   :  { %v1185_v42 = vsel %vm474_vm12, 1.0, %v1336_v21 }
 0x4d0   :  { %v457_v56 = vpop.permute.xlu2 %456 }
 0x4d1   :  { %vm477_vm15 = vcmp.eq.s32.totalorder %v457_v56, %v1647_v16 }
 0x4d2   :  { %v1188_v58 = vsel %vm477_vm15, 1.0, %v1336_v21 }
 0x4e8   :  { %v1263_v5 = vpop.permute.xlu0 %1262 }
 0x4e9   :  { %v1265_v6 = vunpack.i.h.bf16 %v1263_v5  ;;  %v1264_v7 = vunpack.i.l.bf16 %v1263_v5  ;;  %v726_v5 = vld [vmem:[%s1862_s8 + $0x58] sm:$0xff] }
 0x4ea   :  { %755 = vmatpush.msra.mxu0 %v726_v5 }
 0x4eb   :  { %v397_v12 = vsel %vm169_vm1, %v393_v10, %v1264_v7  ;;  %v396_v17 = vsel %vm169_vm1, %v392_v14, %v1265_v6  ;;  %v725_v6 = vld [vmem:[%s1862_s8 + $0x50] sm:$0xff]  ;;  %v724_v7 = vld [vmem:[%s1862_s8 + $0x48] sm:$0xff]  ;;  %v722_v10 = vld [vmem:[%s1862_s8 + $0x38] sm:$0xff] }
 0x4ec   :  { %572 = vmatpush.msra.mxu3 %v397_v12  ;;  %756 = vmatpush.msra.mxu0 %v725_v6  ;;  %v720_v12 = vld [vmem:[%s1862_s8 + $0x28] sm:$0xff] }
 0x4ee   :  { %573 = vmatpush.msra.mxu3 %v396_v17  ;;  %757 = vmatpush.msra.mxu0 %v724_v7  ;;  %v716_v17 = vld [vmem:[%s1862_s8 + $0x8] sm:$0xff] }
 0x4f0   :  { %v418_v1 = vpop.permute.xlu0 %417  ;;  %574 = vmatpush.msra.mxu3 %v395_v19  ;;  %758 = vmatpush.msra.mxu0 %v723_v8 }
 0x4f1   :  { %vm464_vm2 = vcmp.eq.s32.totalorder %v418_v1, %v1647_v16 }
 0x4f2   :  { %v1175_v22 = vsel %vm464_vm2, 1.0, %v1336_v21  ;;  %575 = vmatpush.msra.mxu3 %v394_v2  ;;  %759 = vmatpush.msra.mxu0 %v722_v10 }
 0x4f3   :  { %1191 = vmatmul.msk.f32.vlgmr.msra.gmra.mxu3 %vm67_vm0, %v1175_v22 }
 0x4f4   :  { %760 = vmatpush.msra.mxu0 %v721_v11 }
 0x4f6   :  { %761 = vmatpush.msra.mxu0 %v720_v12 }
 0x4f8   :  { %v433_v29 = vpop.permute.xlu0 %432  ;;  %762 = vmatpush.msra.mxu0 %v719_v13 }
 0x4f9   :  { %vm469_vm7 = vcmp.eq.s32.totalorder %v433_v29, %v1647_v16  ;;  %v813_v29 = vld [vmem:[%s1864_s10 + $0x28] sm:$0xff] }
 0x4fa   :  { %v1180_v30 = vsel %vm469_vm7, 1.0, %v1336_v21  ;;  %763 = vmatpush.msra.mxu0 %v718_v15 }
 0x4fb   :  { %1192 = vmatmul.msk.f32.gmra.mxu3 %vm67_vm0, %v1176_v3 }
 0x500   :  { %v442_v35 = vpop.permute.xlu0 %441 }
 0x501   :  { %vm472_vm10 = vcmp.eq.s32.totalorder %v442_v35, %v1647_v16 }
 0x502   :  { %v1183_v36 = vsel %vm472_vm10, 1.0, %v1336_v21 }
 0x503   :  { %1193 = vmatmul.msk.f32.gmra.mxu3 %vm67_vm0, %v1177_v4 }
 0x508   :  { %v451_v45 = vpop.permute.xlu0 %450 }
 0x509   :  { %vm475_vm13 = vcmp.eq.s32.totalorder %v451_v45, %v1647_v16 }
 0x50a   :  { %v1186_v48 = vsel %vm475_vm13, 1.0, %v1336_v21 }
 0x50b   :  { %1194 = vmatmul.msk.f32.gmra.mxu3 %vm67_vm0, %v1178_v26 }
 0x510   :  { %v460_v59 = vpop.permute.xlu0 %459 }
 0x511   :  { %vm478_vm2 = vcmp.eq.s32.totalorder %v460_v59, %v1647_v16  ;;  %v717_v16 = vld [vmem:[%s1862_s8 + $0x10] sm:$0xff] }
 0x512   :  { %v1189_v60 = vsel %vm478_vm2, 1.0, %v1336_v21  ;;  %764 = vmatpush.msra.mxu0 %v717_v16  ;;  %v1272_v16 = vld [vmem:[%s1865_s11] ss:$0 sm:$0xff]  ;;  %s1337_s11 = smov [#allocation3]  }
 0x513   :  { %1195 = vmatmul.msk.f32.gmra.mxu3 %vm67_vm0, %v1179_v28  ;;  %v814_v28 = vld [vmem:[%s1864_s10 + $0x30] sm:$0xff] }
 0x514   :  { %765 = vmatpush.msra.mxu0 %v716_v17  ;;  %853 = vmatpush.msra.mxu1 %v814_v28  ;;  %v1273_v17 = vld [vmem:[%s1866_s12] ss:$0 sm:$0xff]  ;;  %s1137_s12 = sshll.u32 %s1337_s11, 4  ;;  %s1138_s12 = int_to_ptr.vmem [resolvable:$true] %s1137_s12 }
 0x516   :  { %766 = vmatpush.msra.mxu0 %v715_v18  ;;  %854 = vmatpush.msra.mxu1 %v813_v29 }
 0x51b   :  { %1196 = vmatmul.msk.f32.gmra.mxu3 %vm67_vm0, %v1180_v30  ;;  %v812_v30 = vld [vmem:[%s1864_s10 + $0x20] sm:$0xff] }
 0x51c   :  { %855 = vmatpush.msra.mxu1 %v812_v30 }
 0x51e   :  { %856 = vmatpush.msra.mxu1 %v811_v31 }
 0x523   :  { %1197 = vmatmul.msk.f32.gmra.mxu3 %vm67_vm0, %v1181_v32  ;;  %v810_v32 = vld [vmem:[%s1864_s10 + $0x10] sm:$0xff] }
 0x524   :  { %857 = vmatpush.msra.mxu1 %v810_v32 }
 0x526   :  { %858 = vmatpush.msra.mxu1 %v809_v33 }
 0x52b   :  { %1198 = vmatmul.msk.f32.gmra.mxu3 %vm67_vm0, %v1182_v34  ;;  %v808_v34 = vld [vmem:[%s1864_s10] sm:$0xff] }
 0x52c   :  { %859 = vmatpush.msra.mxu1 %v808_v34 }
 0x533   :  { %1199 = vmatmul.msk.f32.gmra.mxu3 %vm67_vm0, %v1183_v36 }
 0x53b   :  { %1200 = vmatmul.msk.f32.gmra.mxu3 %vm67_vm0, %v1184_v38 }
 0x543   :  { %1201 = vmatmul.msk.f32.gmra.mxu3 %vm67_vm0, %v1185_v42 }
 0x54b   :  { %1202 = vmatmul.msk.f32.gmra.mxu3 %vm67_vm0, %v1186_v48 }
 0x553   :  { %1203 = vmatmul.msk.f32.gmra.mxu3 %vm67_vm0, %v1187_v55 }
 0x55b   :  { %1204 = vmatmul.msk.f32.gmra.mxu3 %vm67_vm0, %v1188_v58 }
 0x563   :  { %1205 = vmatmul.msk.f32.gmra.mxu3 %vm67_vm0, %v1189_v60 }
 0x56b   :  { %1206 = vmatmul.msk.f32.gmra.mxu3 %vm67_vm0, %v1190_v62 }
 0x576   :  { %v577_v63 = vpop.f32.mrf.mxu3 }
 0x577   :  { %1207 = vmatmul.msk.f32.vlgmr.msra.gmra.mxu2 %vm638_vm4, %v577_v63 }
 0x57e   :  { %v580_v0 = vpop.f32.mrf.mxu3 }
 0x57f   :  { %1208 = vmatmul.msk.f32.gmra.mxu2 %vm638_vm4, %v580_v0 }
 0x586   :  { %v583_v9 = vpop.f32.mrf.mxu3 }
 0x587   :  { %1209 = vmatmul.msk.f32.gmra.mxu2 %vm638_vm4, %v583_v9 }
 0x58e   :  { %v586_v14 = vpop.f32.mrf.mxu3 }
 0x58f   :  { %1210 = vmatmul.msk.f32.gmra.mxu2 %vm638_vm4, %v586_v14 }
 0x596   :  { %v589_v19 = vpop.f32.mrf.mxu3 }
 0x597   :  { %1211 = vmatmul.msk.f32.gmra.mxu2 %vm638_vm4, %v589_v19 }
 0x59e   :  { %v592_v1 = vpop.f32.mrf.mxu3 }
 0x59f   :  { %1212 = vmatmul.msk.f32.gmra.mxu2 %vm638_vm4, %v592_v1 }
 0x5a6   :  { %v595_v20 = vpop.f32.mrf.mxu3 }
 0x5a7   :  { %1213 = vmatmul.msk.f32.gmra.mxu2 %vm638_vm4, %v595_v20 }
 0x5ae   :  { %v598_v2 = vpop.f32.mrf.mxu3 }
 0x5af   :  { %1214 = vmatmul.msk.f32.gmra.mxu2 %vm638_vm4, %v598_v2 }
 0x5b6   :  { %v601_v21 = vpop.f32.mrf.mxu3 }
 0x5b7   :  { %1215 = vmatmul.msk.f32.vlgmr.msra.gmra.mxu0 %vm638_vm4, %v601_v21 }
 0x5be   :  { %v604_v22 = vpop.f32.mrf.mxu3 }
 0x5bf   :  { %1216 = vmatmul.msk.f32.gmra.mxu0 %vm638_vm4, %v604_v22 }
 0x5c6   :  { %v607_v23 = vpop.f32.mrf.mxu3 }
 0x5c7   :  { %1217 = vmatmul.msk.f32.gmra.mxu0 %vm638_vm4, %v607_v23 }
 0x5ce   :  { %v610_v3 = vpop.f32.mrf.mxu3 }
 0x5cf   :  { %1218 = vmatmul.msk.f32.gmra.mxu0 %vm638_vm4, %v610_v3 }
 0x5d6   :  { %v613_v24 = vpop.f32.mrf.mxu3 }
 0x5d7   :  { %1219 = vmatmul.msk.f32.gmra.mxu0 %vm638_vm4, %v613_v24 }
 0x5de   :  { %v616_v4 = vpop.f32.mrf.mxu3 }
 0x5df   :  { %1220 = vmatmul.msk.f32.gmra.mxu0 %vm638_vm4, %v616_v4 }
 0x5e6   :  { %v619_v25 = vpop.f32.mrf.mxu3 }
 0x5e7   :  { %1221 = vmatmul.msk.f32.gmra.mxu0 %vm638_vm4, %v619_v25 }
 0x5ee   :  { %v622_v26 = vpop.f32.mrf.mxu3 }
 0x5ef   :  { %1222 = vmatmul.msk.f32.gmra.mxu0 %vm638_vm4, %v622_v26 }
 0x5fa   :  { %v680_v35 = vpop.f32.mrf.mxu2 }
 0x5fb   :  { %v707_v38 = vadd.f32 %v1271_v37, %v680_v35 }
 0x602   :  { %v683_v36 = vpop.f32.mrf.mxu2 }
 0x603   :  { %v708_v43 = vadd.f32 %v1271_v37, %v683_v36 }
 0x60a   :  { %v686_v41 = vpop.f32.mrf.mxu2 }
 0x60b   :  { %v709_v48 = vadd.f32 %v1271_v37, %v686_v41 }
 0x612   :  { %v689_v47 = vpop.f32.mrf.mxu2 }
 0x613   :  { %v710_v53 = vadd.f32 %v1271_v37, %v689_v47 }
 0x61a   :  { %v692_v52 = vpop.f32.mrf.mxu2 }
 0x61b   :  { %v711_v57 = vadd.f32 %v1271_v37, %v692_v52 }
 0x622   :  { %v695_v58 = vpop.f32.mrf.mxu2 }
 0x623   :  { %v712_v62 = vadd.f32 %v1271_v37, %v695_v58 }
 0x62a   :  { %v698_v5 = vpop.f32.mrf.mxu2 }
 0x62b   :  { %v713_v7 = vadd.f32 %v1271_v37, %v698_v5 }
 0x632   :  { %v701_v11 = vpop.f32.mrf.mxu2 }
 0x633   :  { %v714_v12 = vadd.f32 %v1271_v37, %v701_v11 }
 0x634   :  { %v768_v39 = vpop.f32.mrf.mxu0 }
 0x635   :  { %v792_v40 = vadd.f32 %v768_v39, %v707_v38 }
 0x637   :  { %v800_v42 = vmax.f32 %v792_v40, 0.0 }
 0x639   :  { %1223 = vmatmul.msk.f32.vlgmr.msra.gmra.mxu1 %vm169_vm1, %v800_v42 }
 0x63c   :  { %v771_v44 = vpop.f32.mrf.mxu0 }
 0x63d   :  { %v793_v45 = vadd.f32 %v771_v44, %v708_v43 }
 0x63f   :  { %v801_v46 = vmax.f32 %v793_v45, 0.0 }
 0x641   :  { %1224 = vmatmul.msk.f32.gmra.mxu1 %vm169_vm1, %v801_v46  ;;  %v1841_v46 = vld [vmem:[#allocation2] ss:$0 sm:$0xff] }
 0x644   :  { %v774_v49 = vpop.f32.mrf.mxu0 }
 0x645   :  { %v794_v50 = vadd.f32 %v774_v49, %v709_v48 }
 0x647   :  { %v802_v51 = vmax.f32 %v794_v50, 0.0 }
 0x649   :  { %1225 = vmatmul.msk.f32.gmra.mxu1 %vm169_vm1, %v802_v51 }
 0x64c   :  { %v777_v54 = vpop.f32.mrf.mxu0 }
 0x64d   :  { %v795_v55 = vadd.f32 %v777_v54, %v710_v53 }
 0x64f   :  { %v803_v56 = vmax.f32 %v795_v55, 0.0 }
 0x651   :  { %1226 = vmatmul.msk.f32.gmra.mxu1 %vm169_vm1, %v803_v56 }
 0x654   :  { %v780_v59 = vpop.f32.mrf.mxu0 }
 0x655   :  { %v796_v60 = vadd.f32 %v780_v59, %v711_v57 }
 0x657   :  { %v804_v61 = vmax.f32 %v796_v60, 0.0 }
 0x659   :  { %1227 = vmatmul.msk.f32.gmra.mxu1 %vm169_vm1, %v804_v61 }
 0x65c   :  { %v783_v63 = vpop.f32.mrf.mxu0 }
 0x65d   :  { %v797_v0 = vadd.f32 %v783_v63, %v712_v62 }
 0x65f   :  { %v805_v6 = vmax.f32 %v797_v0, 0.0 }
 0x661   :  { %1228 = vmatmul.msk.f32.gmra.mxu1 %vm169_vm1, %v805_v6 }
 0x664   :  { %v786_v8 = vpop.f32.mrf.mxu0 }
 0x665   :  { %v798_v9 = vadd.f32 %v786_v8, %v713_v7 }
 0x667   :  { %v806_v10 = vmax.f32 %v798_v9, 0.0 }
 0x669   :  { %1229 = vmatmul.msk.f32.gmra.mxu1 %vm169_vm1, %v806_v10 }
 0x66c   :  { %v789_v13 = vpop.f32.mrf.mxu0 }
 0x66d   :  { %v799_v14 = vadd.f32 %v789_v13, %v714_v12 }
 0x66f   :  { %v807_v15 = vmax.f32 %v799_v14, 0.0 }
 0x671   :  { %1230 = vmatmul.msk.f32.gmra.mxu1 %vm169_vm1, %v807_v15 }
 0x6b6   :  { %v861_v18 = vpop.f32.mrf.mxu1 }
 0x6b7   :  { %v862_v19 = vadd.f32 %v1272_v16, %v861_v18 }
 0x6b9   :  { %v889_v1 = vmul.f32 %v1273_v17, %v862_v19 }
 0x6bb   :  { %v897_v20 = vsel %vm67_vm0, %v889_v1, 0.0 }
 0x6bc   :  { %898 = vadd.xlane.f32.xlu2 %v897_v20 }
 0x6be   :  { %v864_v2 = vpop.f32.mrf.mxu1 }
 0x6bf   :  { %v865_v21 = vadd.f32 %v1272_v16, %v864_v2 }
 0x6c1   :  { %v890_v22 = vmul.f32 %v1273_v17, %v865_v21 }
 0x6c3   :  { %v900_v23 = vsel %vm67_vm0, %v890_v22, 0.0 }
 0x6c4   :  { %901 = vadd.xlane.f32.xlu0 %v900_v23 }
 0x6c6   :  { %v867_v3 = vpop.f32.mrf.mxu1 }
 0x6c7   :  { %v868_v24 = vadd.f32 %v1272_v16, %v867_v3 }
 0x6c9   :  { %v891_v4 = vmul.f32 %v1273_v17, %v868_v24 }
 0x6cb   :  { %v903_v25 = vsel %vm67_vm0, %v891_v4, 0.0 }
 0x6cc   :  { %904 = vadd.xlane.f32.xlu1 %v903_v25 }
 0x6ce   :  { %v870_v26 = vpop.f32.mrf.mxu1 }
 0x6cf   :  { %v871_v27 = vadd.f32 %v1272_v16, %v870_v26 }
 0x6d1   :  { %v892_v28 = vmul.f32 %v1273_v17, %v871_v27 }
 0x6d3   :  { %v906_v29 = vsel %vm67_vm0, %v892_v28, 0.0 }
 0x6d4   :  { %907 = vadd.xlane.f32.xlu2 %v906_v29 }
 0x6d6   :  { %v873_v30 = vpop.f32.mrf.mxu1 }
 0x6d7   :  { %v874_v31 = vadd.f32 %v1272_v16, %v873_v30 }
 0x6d9   :  { %v893_v32 = vmul.f32 %v1273_v17, %v874_v31 }
 0x6db   :  { %v909_v33 = vsel %vm67_vm0, %v893_v32, 0.0 }
 0x6dc   :  { %910 = vadd.xlane.f32.xlu2 %v909_v33 }
 0x6de   :  { %v876_v34 = vpop.f32.mrf.mxu1 }
 0x6df   :  { %v877_v35 = vadd.f32 %v1272_v16, %v876_v34 }
 0x6e1   :  { %v894_v36 = vmul.f32 %v1273_v17, %v877_v35 }
 0x6e3   :  { %v912_v37 = vsel %vm67_vm0, %v894_v36, 0.0 }
 0x6e4   :  { %913 = vadd.xlane.f32.xlu0 %v912_v37 }
 0x6e6   :  { %v879_v38 = vpop.f32.mrf.mxu1 }
 0x6e7   :  { %v880_v39 = vadd.f32 %v1272_v16, %v879_v38 }
 0x6e9   :  { %v895_v40 = vmul.f32 %v1273_v17, %v880_v39 }
 0x6eb   :  { %v915_v41 = vsel %vm67_vm0, %v895_v40, 0.0 }
 0x6ec   :  { %916 = vadd.xlane.f32.xlu1 %v915_v41 }
 0x6ee   :  { %v882_v42 = vpop.f32.mrf.mxu1 }
 0x6ef   :  { %v883_v43 = vadd.f32 %v1272_v16, %v882_v42 }
 0x6f1   :  { %v896_v44 = vmul.f32 %v1273_v17, %v883_v43 }
 0x6f3   :  { %v918_v45 = vsel %vm67_vm0, %v896_v44, 0.0 }
 0x6f4   :  { %919 = vadd.xlane.f32.xlu2 %v918_v45 }
 0x72f   :  { %v899_v47 = vpop.xlane.xlu2 %898 }
 0x730   :  { %v925_v48 = vadd.f32 %v1841_v46, %v899_v47 }
 0x732   :  { %v1231_v49 = vmul.f32 -1.442695, %v925_v48 }
 0x734   :  { %1275 = vpow2.f32 %v1231_v49 }
 0x737   :  { %v902_v50 = vpop.xlane.xlu0 %901 }
 0x738   :  { %v926_v51 = vadd.f32 %v1841_v46, %v902_v50 }
 0x73a   :  { %v1276_v52 = vpop.eup %1275  ;;  %v1232_v53 = vmul.f32 -1.442695, %v926_v51 }
 0x73b   :  { %v957_v54 = vadd.f32 1.0, %v1276_v52 }
 0x73c   :  { %1277 = vpow2.f32 %v1232_v53 }
 0x73d   :  { %1279 = vrcp.f32 %v957_v54  ;;  %v976_v0 = vand.u32 2147483648, %v957_v54  ;;  %v974_v7 = vand.u32 2147483647, %v957_v54  ;;  %vm970_vm1 = vweird.f32 %v957_v54 }
 0x73f   :  { %v905_v55 = vpop.xlane.xlu1 %904  ;;  %v977_v13 = vor.u32 1.1754944e-38, %v976_v0  ;;  %vm975_vm6 = vcmp.eq.f32.partialorder %v974_v7, 8.507059e+37 }
 0x740   :  { %v927_v56 = vadd.f32 %v1841_v46, %v905_v55 }
 0x742   :  { %v1278_v57 = vpop.eup %1277  ;;  %v1233_v58 = vmul.f32 -1.442695, %v927_v56 }
 0x743   :  { %v1280_v59 = vpop.eup %1279  ;;  %v958_v60 = vadd.f32 1.0, %v1278_v57 }
 0x744   :  { %1281 = vpow2.f32 %v1233_v58  ;;  %v966_v61 = vmul.f32 %v1280_v59, %v957_v54  ;;  %vm971_vm0 = vweird.f32 %v1280_v59 }
 0x745   :  { %1283 = vrcp.f32 %v958_v60  ;;  %vm972_vm5 = vmor %vm970_vm1, %vm971_vm0  ;;  %v991_v19 = vand.u32 2147483648, %v958_v60  ;;  %v989_v2 = vand.u32 2147483647, %v958_v60  ;;  %vm985_vm8 = vweird.f32 %v958_v60 }
 0x746   :  { %v967_v62 = vsub.f32 1.0, %v966_v61 }
 0x747   :  { %v908_v63 = vpop.xlane.xlu2 %907  ;;  %v992_v4 = vor.u32 1.1754944e-38, %v991_v19  ;;  %vm990_vm10 = vcmp.eq.f32.partialorder %v989_v2, 8.507059e+37 }
 0x748   :  { %v928_v5 = vadd.f32 %v1841_v46, %v908_v63  ;;  %v968_v6 = vmul.f32 %v1280_v59, %v967_v62 }
 0x74a   :  { %v1282_v8 = vpop.eup %1281  ;;  %v1234_v9 = vmul.f32 -1.442695, %v928_v5  ;;  %v969_v10 = vadd.f32 %v1280_v59, %v968_v6 }
 0x74b   :  { %v1284_v11 = vpop.eup %1283  ;;  %v959_v12 = vadd.f32 1.0, %v1282_v8 }
 0x74c   :  { %1285 = vpow2.f32 %v1234_v9  ;;  %v973_v14 = vsel %vm972_vm5, %v1280_v59, %v969_v10  ;;  %v981_v15 = vmul.f32 %v1284_v11, %v958_v60  ;;  %vm986_vm7 = vweird.f32 %v1284_v11 }
 0x74d   :  { %1287 = vrcp.f32 %v959_v12  ;;  %v978_v16 = vsel %vm975_vm6, %v977_v13, %v973_v14  ;;  %vm987_vm9 = vmor %vm985_vm8, %vm986_vm7  ;;  %v1006_v30 = vand.u32 2147483648, %v959_v12  ;;  %v1004_v33 = vand.u32 2147483647, %v959_v12 }
 0x74e   :  { %1087 = vperm.xlu0 %1266, %v978_v16   ;;  %v982_v17 = vsub.f32 1.0, %v981_v15  ;;  %vm1000_vm12 = vweird.f32 %v959_v12 }
 0x74f   :  { %v911_v18 = vpop.xlane.xlu2 %910  ;;  %v1007_v39 = vor.u32 1.1754944e-38, %v1006_v30  ;;  %vm1005_vm14 = vcmp.eq.f32.partialorder %v1004_v33, 8.507059e+37 }
 0x750   :  { %v929_v1 = vadd.f32 %v1841_v46, %v911_v18  ;;  %v983_v20 = vmul.f32 %v1284_v11, %v982_v17 }
 0x752   :  { %v1286_v21 = vpop.eup %1285  ;;  %v1235_v22 = vmul.f32 -1.442695, %v929_v1  ;;  %v984_v23 = vadd.f32 %v1284_v11, %v983_v20 }
 0x753   :  { %v1288_v3 = vpop.eup %1287  ;;  %v960_v24 = vadd.f32 1.0, %v1286_v21 }
 0x754   :  { %1289 = vpow2.f32 %v1235_v22  ;;  %v988_v25 = vsel %vm987_vm9, %v1284_v11, %v984_v23  ;;  %v996_v26 = vmul.f32 %v1288_v3, %v959_v12  ;;  %vm1001_vm11 = vweird.f32 %v1288_v3 }
 0x755   :  { %1291 = vrcp.f32 %v960_v24  ;;  %v993_v27 = vsel %vm990_vm10, %v992_v4, %v988_v25  ;;  %vm1002_vm13 = vmor %vm1000_vm12, %vm1001_vm11  ;;  %v1021_v45 = vand.u32 2147483648, %v960_v24  ;;  %v1019_v49 = vand.u32 2147483647, %v960_v24 }
 0x756   :  { %1092 = vperm.xlu1 %1267, %v993_v27   ;;  %v997_v28 = vsub.f32 1.0, %v996_v26  ;;  %vm1015_vm2 = vweird.f32 %v960_v24 }
 0x757   :  { %v914_v29 = vpop.xlane.xlu0 %913  ;;  %v1022_v55 = vor.u32 1.1754944e-38, %v1021_v45  ;;  %vm1020_vm4 = vcmp.eq.f32.partialorder %v1019_v49, 8.507059e+37 }
 0x758   :  { %v930_v31 = vadd.f32 %v1841_v46, %v914_v29  ;;  %v998_v32 = vmul.f32 %v1288_v3, %v997_v28 }
 0x75a   :  { %v1290_v34 = vpop.eup %1289  ;;  %v1236_v35 = vmul.f32 -1.442695, %v930_v31  ;;  %v999_v36 = vadd.f32 %v1288_v3, %v998_v32 }
 0x75b   :  { %v1292_v37 = vpop.eup %1291  ;;  %v961_v38 = vadd.f32 1.0, %v1290_v34 }
 0x75c   :  { %1293 = vpow2.f32 %v1236_v35  ;;  %v1003_v40 = vsel %vm1002_vm13, %v1288_v3, %v999_v36  ;;  %v1011_v41 = vmul.f32 %v1292_v37, %v960_v24  ;;  %vm1016_vm15 = vweird.f32 %v1292_v37 }
 0x75d   :  { %1295 = vrcp.f32 %v961_v38  ;;  %v1008_v42 = vsel %vm1005_vm14, %v1007_v39, %v1003_v40  ;;  %vm1017_vm3 = vmor %vm1015_vm2, %vm1016_vm15  ;;  %v1036_v61 = vand.u32 2147483648, %v961_v38  ;;  %v1034_v0 = vand.u32 2147483647, %v961_v38 }
 0x75e   :  { %1097 = vperm.xlu2 %1268, %v1008_v42   ;;  %v1012_v43 = vsub.f32 1.0, %v1011_v41  ;;  %vm1030_vm1 = vweird.f32 %v961_v38 }
 0x75f   :  { %v917_v44 = vpop.xlane.xlu1 %916  ;;  %v1037_v10 = vor.u32 1.1754944e-38, %v1036_v61  ;;  %vm1035_vm6 = vcmp.eq.f32.partialorder %v1034_v0, 8.507059e+37 }
 0x760   :  { %v931_v47 = vadd.f32 %v1841_v46, %v917_v44  ;;  %v1013_v48 = vmul.f32 %v1292_v37, %v1012_v43 }
 0x762   :  { %v1294_v50 = vpop.eup %1293  ;;  %v1237_v51 = vmul.f32 -1.442695, %v931_v47  ;;  %v1014_v52 = vadd.f32 %v1292_v37, %v1013_v48 }
 0x763   :  { %v1296_v53 = vpop.eup %1295  ;;  %v962_v54 = vadd.f32 1.0, %v1294_v50 }
 0x764   :  { %1297 = vpow2.f32 %v1237_v51  ;;  %v1018_v56 = vsel %vm1017_vm3, %v1292_v37, %v1014_v52  ;;  %v1026_v57 = vmul.f32 %v1296_v53, %v961_v38  ;;  %vm1031_vm0 = vweird.f32 %v1296_v53 }
 0x765   :  { %1299 = vrcp.f32 %v962_v54  ;;  %v1023_v58 = vsel %vm1020_vm4, %v1022_v55, %v1018_v56  ;;  %vm1032_vm5 = vmor %vm1030_vm1, %vm1031_vm0  ;;  %v1049_v16 = vand.u32 2147483647, %v962_v54  ;;  %vm1045_vm8 = vweird.f32 %v962_v54 }
 0x766   :  { %1102 = vperm.xlu0 %1266, %v1023_v58   ;;  %v1027_v59 = vsub.f32 1.0, %v1026_v57 }
 0x767   :  { %v920_v60 = vpop.xlane.xlu2 %919  ;;  %vm1050_vm10 = vcmp.eq.f32.partialorder %v1049_v16, 8.507059e+37 }
 0x768   :  { %v932_v62 = vadd.f32 %v1841_v46, %v920_v60  ;;  %v1028_v63 = vmul.f32 %v1296_v53, %v1027_v59  ;;  %v1051_v46 = vand.u32 2147483648, %v962_v54 }
 0x76a   :  { %v1298_v5 = vpop.eup %1297  ;;  %v1238_v6 = vmul.f32 -1.442695, %v932_v62  ;;  %v1029_v7 = vadd.f32 %v1296_v53, %v1028_v63  ;;  %v1052_v20 = vor.u32 1.1754944e-38, %v1051_v46 }
 0x76b   :  { %v1300_v8 = vpop.eup %1299  ;;  %v963_v9 = vadd.f32 1.0, %v1298_v5 }
 0x76c   :  { %1301 = vpow2.f32 %v1238_v6  ;;  %v1033_v11 = vsel %vm1032_vm5, %v1296_v53, %v1029_v7  ;;  %v1041_v12 = vmul.f32 %v1300_v8, %v962_v54  ;;  %vm1046_vm7 = vweird.f32 %v1300_v8 }
 0x76d   :  { %1303 = vrcp.f32 %v963_v9  ;;  %v1038_v13 = vsel %vm1035_vm6, %v1037_v10, %v1033_v11  ;;  %vm1047_vm9 = vmor %vm1045_vm8, %vm1046_vm7  ;;  %v1066_v3 = vand.u32 2147483648, %v963_v9  ;;  %v1064_v4 = vand.u32 2147483647, %v963_v9 }
 0x76e   :  { %1107 = vperm.xlu1 %1267, %v1038_v13   ;;  %v1042_v14 = vsub.f32 1.0, %v1041_v12  ;;  %vm1060_vm12 = vweird.f32 %v963_v9 }
 0x76f   :  { %v1067_v27 = vor.u32 1.1754944e-38, %v1066_v3  ;;  %vm1065_vm14 = vcmp.eq.f32.partialorder %v1064_v4, 8.507059e+37 }
 0x770   :  { %v1043_v15 = vmul.f32 %v1300_v8, %v1042_v14 }
 0x772   :  { %v1302_v17 = vpop.eup %1301  ;;  %v1044_v18 = vadd.f32 %v1300_v8, %v1043_v15 }
 0x773   :  { %v1304_v19 = vpop.eup %1303  ;;  %v964_v1 = vadd.f32 1.0, %v1302_v17 }
 0x774   :  { %v1048_v2 = vsel %vm1047_vm9, %v1300_v8, %v1044_v18  ;;  %v1056_v21 = vmul.f32 %v1304_v19, %v963_v9  ;;  %vm1061_vm11 = vweird.f32 %v1304_v19 }
 0x775   :  { %1305 = vrcp.f32 %v964_v1  ;;  %v1053_v22 = vsel %vm1050_vm10, %v1052_v20, %v1048_v2  ;;  %vm1062_vm13 = vmor %vm1060_vm12, %vm1061_vm11  ;;  %v1081_v32 = vand.u32 2147483648, %v964_v1  ;;  %v1079_v34 = vand.u32 2147483647, %v964_v1 }
 0x776   :  { %1112 = vperm.xlu0 %1266, %v1053_v22   ;;  %v1057_v23 = vsub.f32 1.0, %v1056_v21  ;;  %vm1075_vm2 = vweird.f32 %v964_v1 }
 0x777   :  { %v1082_v36 = vor.u32 1.1754944e-38, %v1081_v32  ;;  %vm1080_vm4 = vcmp.eq.f32.partialorder %v1079_v34, 8.507059e+37 }
 0x778   :  { %v1058_v24 = vmul.f32 %v1304_v19, %v1057_v23 }
 0x77a   :  { %v1059_v25 = vadd.f32 %v1304_v19, %v1058_v24 }
 0x77b   :  { %v1306_v26 = vpop.eup %1305 }
 0x77c   :  { %v1063_v28 = vsel %vm1062_vm13, %v1304_v19, %v1059_v25  ;;  %v1071_v29 = vmul.f32 %v1306_v26, %v964_v1  ;;  %vm1076_vm15 = vweird.f32 %v1306_v26 }
 0x77d   :  { %v1068_v30 = vsel %vm1065_vm14, %v1067_v27, %v1063_v28  ;;  %vm1077_vm3 = vmor %vm1075_vm2, %vm1076_vm15 }
 0x77e   :  { %1117 = vperm.xlu2 %1268, %v1068_v30   ;;  %v1072_v31 = vsub.f32 1.0, %v1071_v29 }
 0x780   :  { %v1073_v33 = vmul.f32 %v1306_v26, %v1072_v31 }
 0x782   :  { %v1074_v35 = vadd.f32 %v1306_v26, %v1073_v33 }
 0x784   :  { %v1078_v37 = vsel %vm1077_vm3, %v1306_v26, %v1074_v35 }
 0x785   :  { %v1083_v38 = vsel %vm1080_vm4, %v1082_v36, %v1078_v37 }
 0x786   :  { %1122 = vperm.xlu1 %1267, %v1083_v38  }
 0x7b8   :  { %v1098_v39 = vpop.permute.xlu2 %1097 }
 0x7b9   :  { %1127 = vst [vmem:[#allocation3 + $0x10] sm:$0xff] %v1098_v39 }
 0x7c0   :  { %v1088_v40 = vpop.permute.xlu0 %1087 }
 0x7c1   :  { %1125 = vst [vmem:[#allocation3] sm:$0xff] %v1088_v40 }
 0x7c8   :  { %v1093_v41 = vpop.permute.xlu1 %1092 }
 0x7c9   :  { %1126 = vst [vmem:[#allocation3 + $0x8] sm:$0xff] %v1093_v41 }
 0x7d8   :  { %v1103_v42 = vpop.permute.xlu0 %1102  ;;  %v1118_v43 = vpop.permute.xlu2 %1117 }
 0x7d9   :  { %1128 = vst [vmem:[#allocation3 + $0x18] sm:$0xff] %v1103_v42 }
 0x7da   :  { %1131 = vst [vmem:[#allocation3 + $0x30] sm:$0xff] %v1118_v43 }
 0x7e0   :  { %v1108_v44 = vpop.permute.xlu1 %1107 }
 0x7e1   :  { %1129 = vst [vmem:[#allocation3 + $0x20] sm:$0xff] %v1108_v44 }
 0x7e8   :  { %v1113_v45 = vpop.permute.xlu0 %1112 }
 0x7e9   :  { %1130 = vst [vmem:[#allocation3 + $0x28] sm:$0xff] %v1113_v45 }
 0x7f8   :  { %v1123_v47 = vpop.permute.xlu1 %1122 }
 0x7f9   :  { %1132 = vst [vmem:[#allocation3 + $0x38] sm:$0xff] %v1123_v47 }
 0x7fa   :  { %1145 = dma.vmem_to_hbm [thread:$0]  %s1138_s12, 1024, %s1140_s28, [#allocation4], %s1338_s1, %s1338_s1, %s1339_s29  }
 0x7fb   :  { %1331 = dma.done.wait [#allocation4], 1024  }
 0x7fc   :  { %1332 = vsyncadd [#allocation4], 4294966272 }
 0x7fd   :  { %1150 = vsyncpa [#allocation4], 1 }

</bundles_post_ra>
